<compile_context>
chip_gen: v5e
topology: v5e:2x2
jax: 0.10.0
libtpu: 0.0.40
codegen_flags: <defaults>
</compile_context>

<pallas_src>
import jax
import jax.numpy as jnp
from jax.experimental import pallas as pl
from jax.experimental.pallas import tpu as pltpu

_LANE = 128


def _round_up(x, m):
    return ((x + m - 1) // m) * m


def _sublane(dtype):
    # Minimum sublane multiple for a block's second-to-last dim, per dtype width.
    return {4: 8, 2: 16, 1: 32}[jnp.dtype(dtype).itemsize]


def make_wire_kernel(n_pad: int, compute_dtype):
    def wire_kernel(x_ref, w_ref, b_ref, o_ref):
        x = x_ref[...]
        if x.dtype != compute_dtype:
            # Only hit when caller keeps f32 activations with bf16 weights; the
            # cast is a cheap VPU op (weight DMA bytes are already narrow).
            x = x.astype(compute_dtype)
        # Single fused matmul (omega_0 / scale_0 already folded into w / b);
        # f32 accumulation on the MXU, bias add in f32 on the VPU.
        y = jnp.dot(x, w_ref[...], preferred_element_type=jnp.float32) + b_ref[...]
        omega = y[:, :n_pad]   # == omega_0 * (x @ Wf + bf)   (lane-aligned slice)
        scl = y[:, n_pad:]     # == scale_0 * (x @ Ws + bs)
        # exp() goes to the EUP (separate slot); cos() lowers to VPU range
        # reduction + polynomial -- the likely binding unit once DMAs are narrow.
        o_ref[...] = (jnp.cos(omega) * jnp.exp(-(scl * scl))).astype(o_ref.dtype)

    return wire_kernel


def prepare_wire_params(wf, bf, ws, bs, *, omega_0=10.0, scale_0=40.0,
                        weight_dtype=jnp.float32, pad_in_to=None):
    """One-time parameter prep (do NOT call per forward pass).

    wf/ws: (in_size, out_size)  -- already transposed vs. PyTorch's (out, in).
    bf/bs: (out_size,) or (1, out_size).

    Folds omega_0 / scale_0 into the linear params, zero-pads the feature axis
    to a multiple of 128 lanes, and fuses [freqs | scale] into a single weight
    of shape (K, 2*Np) stored in `weight_dtype` (bf16 => bf16 HBM/DMA bytes)
    plus an f32 bias of shape (1, 2*Np).

    pad_in_to: zero-pad the input (row) axis to this size.  Use it for layer
    chaining with keep_padded=True upstream: the upstream padded output lanes
    hold cos(0)*exp(0)=1, and the zero rows here make them contribute nothing.
    """
    in_size, out_size = wf.shape
    n_pad = _round_up(out_size, _LANE)
    k_pad = in_size if pad_in_to is None else int(pad_in_to)
    assert k_pad >= in_size

    wf = jnp.asarray(wf, jnp.float32)
    ws = jnp.asarray(ws, jnp.float32)
    bf = jnp.reshape(jnp.asarray(bf, jnp.float32), (1, out_size))
    bs = jnp.reshape(jnp.asarray(bs, jnp.float32), (1, out_size))

    def pad_w(a):
        return jnp.pad(a, ((0, k_pad - in_size), (0, n_pad - out_size)))

    def pad_b(a):
        return jnp.pad(a, ((0, 0), (0, n_pad - out_size)))

    w_fused = jnp.concatenate(
        [pad_w(omega_0 * wf), pad_w(scale_0 * ws)], axis=1).astype(weight_dtype)
    # Bias stays f32: negligible bytes, added after the f32 accumulation.
    b_fused = jnp.concatenate([pad_b(omega_0 * bf), pad_b(scale_0 * bs)], axis=1)
    return w_fused, b_fused


def wire_layer(x, w_fused, b_fused, out_size, *, out_dtype=None, keep_padded=False,
               tile_m=1024, min_grid_steps=8):
    """x: (B, K); w_fused: (K, 2*Np) in f32 or bf16; b_fused: (1, 2*Np) f32."""
    B, K = x.shape
    Kw, two_np = w_fused.shape
    assert Kw == K, f"x feature dim {K} != fused weight rows {Kw}"
    n_pad = two_np // 2
    out_dtype = x.dtype if out_dtype is None else jnp.dtype(out_dtype)
    compute_dtype = w_fused.dtype

    # Rows per grid step: big tiles (low per-step overhead) but enough steps
    # for v7x's two TensorCores + double-buffered pipelining.
    sub = max(_sublane(x.dtype), _sublane(out_dtype))
    tm = _round_up(max(1, pl.cdiv(B, min_grid_steps)), sub)
    tm = min(tm, _round_up(tile_m, sub))
    if tm >= B:
        tm = B                       # single full-extent tile (tiny batches)
    grid = (pl.cdiv(B, tm),)

    # Generation-aware VMEM budget: ~3/4 of physical, capped at 100 MiB
    # (=> ~48 MiB on v7x's 64 MiB/TC, ~96 MiB on v5e/v6e's 128 MiB).
    try:
        vmem_cap = int(pltpu.get_tpu_info().vmem_capacity_bytes)
    except Exception:
        vmem_cap = 64 * 1024 * 1024
    vmem_limit = int(min((vmem_cap * 3) // 4, 100 * 1024 * 1024))

    def _isz(dt):
        return jnp.dtype(dt).itemsize

    cost = pl.CostEstimate(
        flops=int(2 * B * K * two_np),
        transcendentals=int(2 * B * n_pad),
        bytes_accessed=int(B * K * _isz(x.dtype)
                           + K * two_np * _isz(compute_dtype)
                           + two_np * 4
                           + B * n_pad * _isz(out_dtype)),
    )

    def run(weight_pipeline_mode):
        wkw = {} if weight_pipeline_mode is None else dict(pipeline_mode=weight_pipeline_mode)
        return pl.pallas_call(
            make_wire_kernel(n_pad, compute_dtype),
            out_shape=jax.ShapeDtypeStruct((B, n_pad), out_dtype),
            grid_spec=pltpu.PrefetchScalarGridSpec(
                num_scalar_prefetch=0,
                grid=grid,
                in_specs=[
                    pl.BlockSpec((tm, K), lambda i: (i, 0)),          # x: streamed over batch
                    pl.BlockSpec((K, two_np), lambda i: (0, 0), **wkw),  # fused W: VMEM-resident
                    pl.BlockSpec((1, two_np), lambda i: (0, 0), **wkw),  # fused b: VMEM-resident
                ],
                out_specs=pl.BlockSpec((tm, n_pad), lambda i: (i, 0)),   # lane-dense output
            ),
            compiler_params=pltpu.CompilerParams(
                dimension_semantics=("parallel",),   # batch tiles shard across TCs (v7x)
                vmem_limit_bytes=vmem_limit,
            ),
            cost_estimate=cost,
        )(x, w_fused, b_fused)

    # Constant-index blocks are fetched once; request single buffering to halve
    # their VMEM footprint.  Fall back to default double-buffering if the
    # installed jax rejects Buffered(1) for the top-level pipeline.
    try:
        out_padded = run(pl.Buffered(1))
    except Exception:
        out_padded = run(None)

    if keep_padded or out_size == n_pad:
        return out_padded
    # NOTE: this slice is a separate XLA copy over the whole (B, Np) output.
    # For layer chains prefer keep_padded=True + pad_in_to on the next layer,
    # or choose out_size % 128 == 0.
    return out_padded[:, :out_size]


def wire_layer_ref(x, wf, bf, ws, bs, *, omega_0=10.0, scale_0=40.0):
    """Pure-JAX reference with the original (unfused, unfolded) PyTorch semantics."""
    omega = omega_0 * (x @ wf + bf)
    scale = (x @ ws + bs) * scale_0
    return jnp.cos(omega) * jnp.exp(-(scale * scale))


def wire_layer_ref_fused(x, w_fused, b_fused, out_size):
    """Reference that mirrors the kernel's fused/folded math exactly (tight checks)."""
    n_pad = w_fused.shape[1] // 2
    y = jnp.dot(x.astype(w_fused.dtype), w_fused,
                preferred_element_type=jnp.float32) + b_fused
    out = jnp.cos(y[:, :n_pad]) * jnp.exp(-(y[:, n_pad:] ** 2))
    return out[:, :out_size]


if __name__ == "__main__":
    in_size, out_size, batch = 32, 64, 8
    omega_0, scale_0 = 10.0, 40.0

    key = jax.random.PRNGKey(0)
    kx, kwf, kbf, kws, kbs = jax.random.split(key, 5)
    bound = 1.0 / (in_size ** 0.5)   # PyTorch nn.Linear default init bound

    x = jax.random.normal(kx, (batch, in_size), dtype=jnp.float32)
    # Stored already transposed to (in_size, out_size) for the kernel.
    wf = jax.random.uniform(kwf, (in_size, out_size), jnp.float32, -bound, bound)
    bf = jax.random.uniform(kbf, (1, out_size), jnp.float32, -bound, bound)
    ws = jax.random.uniform(kws, (in_size, out_size), jnp.float32, -bound, bound)
    bs = jax.random.uniform(kbs, (1, out_size), jnp.float32, -bound, bound)

    ref = wire_layer_ref(x, wf, bf, ws, bs, omega_0=omega_0, scale_0=scale_0)

    # --- f32 accuracy/debug path -------------------------------------------
    w32, b32 = prepare_wire_params(wf, bf, ws, bs, omega_0=omega_0, scale_0=scale_0,
                                   weight_dtype=jnp.float32)
    out32 = jax.block_until_ready(wire_layer(x, w32, b32, out_size))
    assert out32.shape == (batch, out_size) and out32.dtype == jnp.float32
    # Scale folding + fused wide dot change rounding slightly vs. the unfused
    # original, so compare at 1e-4 ...
    assert jnp.allclose(out32, ref, atol=1e-4, rtol=1e-4), "f32 kernel mismatch vs original reference"
    # ... and tightly against a reference using the identical fused/folded params.
    assert jnp.allclose(out32, wire_layer_ref_fused(x, w32, b32, out_size),
                        atol=1e-5, rtol=1e-5), "f32 kernel mismatch vs fused reference"

    # --- bf16 throughput path: bf16 x / W / out IN HBM (real DMA-byte savings) ---
    w16, b16 = prepare_wire_params(wf, bf, ws, bs, omega_0=omega_0, scale_0=scale_0,
                                   weight_dtype=jnp.bfloat16)
    x16 = x.astype(jnp.bfloat16)
    out16 = jax.block_until_ready(
        wire_layer(x16, w16, b16, out_size, out_dtype=jnp.bfloat16))
    assert out16.shape == (batch, out_size) and out16.dtype == jnp.bfloat16
    ref16 = wire_layer_ref_fused(x16, w16, b16, out_size)
    assert jnp.allclose(out16.astype(jnp.float32), ref16.astype(jnp.float32),
                        atol=2e-2, rtol=2e-2), "bf16 kernel mismatch vs bf16 fused reference"
    # cos() is sensitive to bf16 phase error (omega_0 folded in), so only a
    # statistical check against the f32 original is meaningful here.
    mean_abs_diff = jnp.mean(jnp.abs(out16.astype(jnp.float32) - ref))
    assert float(mean_abs_diff) < 0.05, "bf16 path drifted too far from f32 reference"

    print("KERNEL_OK")
</pallas_src>

<mosaic_0001>
module attributes {stable_mosaic.version = 11 : i64} {
  func.func @wire_kernel(%arg0: i32, %arg1: memref<8x32xf32, #tpu.memory_space<vmem>>, %arg2: memref<32x256xf32, #tpu.memory_space<vmem>>, %arg3: memref<1x256xf32, #tpu.memory_space<vmem>>, %arg4: memref<8x128xf32, #tpu.memory_space<vmem>>) attributes {dimension_semantics = [#tpu.dimension_semantics<parallel>], iteration_bounds = array<i64: 1>, scalar_prefetch = 0 : i64, scratch_operands = 0 : i64, tpu.core_type = #tpu.core_type<tc>, window_params = [{transform_indices = @transform_0, window_bounds = array<i64: 8, 32>}, {pipeline_mode = #tpu.pipeline_mode<synchronous>, transform_indices = @transform_1, window_bounds = array<i64: 32, 256>}, {pipeline_mode = #tpu.pipeline_mode<synchronous>, transform_indices = @transform_2, window_bounds = array<i64: 1, 256>}, {transform_indices = @transform_3, window_bounds = array<i64: 8, 128>}]} {
    %c0 = arith.constant 0 : index
    %c0_0 = arith.constant 0 : index
    %0 = vector.load %arg1[%c0, %c0_0] : memref<8x32xf32, #tpu.memory_space<vmem>>, vector<8x32xf32>
    %c0_1 = arith.constant 0 : index
    %c0_2 = arith.constant 0 : index
    %1 = vector.load %arg2[%c0_1, %c0_2] : memref<32x256xf32, #tpu.memory_space<vmem>>, vector<32x256xf32>
    %cst = arith.constant dense<0.000000e+00> : vector<8x256xf32>
    %2 = tpu.matmul %0, %1, %cst {dimension_numbers = #tpu.dot_dimension_numbers<[1], [0], [0], [1], [0, 0, 1, 1], [], []>} : vector<8x32xf32>, vector<32x256xf32>, vector<8x256xf32> -> vector<8x256xf32>
    %c0_3 = arith.constant 0 : index
    %c0_4 = arith.constant 0 : index
    %3 = vector.load %arg3[%c0_3, %c0_4] : memref<1x256xf32, #tpu.memory_space<vmem>>, vector<1x256xf32>
    %4 = vector.broadcast %3 : vector<1x256xf32> to vector<8x256xf32>
    %5 = arith.addf %2, %4 : vector<8x256xf32>
    %6 = vector.extract_strided_slice %5 {offsets = [0, 0], sizes = [8, 128], strides = [1, 1]} : vector<8x256xf32> to vector<8x128xf32>
    %7 = vector.extract_strided_slice %5 {offsets = [0, 128], sizes = [8, 128], strides = [1, 1]} : vector<8x256xf32> to vector<8x128xf32>
    %8 = math.cos %6 : vector<8x128xf32>
    %9 = arith.mulf %7, %7 : vector<8x128xf32>
    %cst_5 = arith.constant 0.000000e+00 : f32
    %10 = vector.broadcast %cst_5 : f32 to vector<8x128xf32>
    %11 = arith.subf %10, %9 : vector<8x128xf32>
    %12 = math.exp %11 : vector<8x128xf32>
    %13 = arith.mulf %8, %12 : vector<8x128xf32>
    %c0_6 = arith.constant 0 : index
    %c0_7 = arith.constant 0 : index
    %14 = vector.load %arg4[%c0_6, %c0_7] : memref<8x128xf32, #tpu.memory_space<vmem>>, vector<8x128xf32>
    tpu.vector_store %arg4[%c0_6, %c0_7], %13 {strides = array<i32>} : memref<8x128xf32, #tpu.memory_space<vmem>>, vector<8x128xf32>,
    return
  }
  func.func @transform_0(%arg0: i32) -> (i32, i32) {
    %c0_i32 = arith.constant 0 : i32
    %c0_i32_0 = arith.constant 0 : i32
    return %arg0, %c0_i32 : i32, i32
  }
  func.func @transform_1(%arg0: i32) -> (i32, i32) {
    %c0_i32 = arith.constant 0 : i32
    %c0_i32_0 = arith.constant 0 : i32
    %c0_i32_1 = arith.constant 0 : i32
    return %c0_i32, %c0_i32_0 : i32, i32
  }
  func.func @transform_2(%arg0: i32) -> (i32, i32) {
    %c0_i32 = arith.constant 0 : i32
    %c0_i32_0 = arith.constant 0 : i32
    %c0_i32_1 = arith.constant 0 : i32
    return %c0_i32, %c0_i32_0 : i32, i32
  }
  func.func @transform_3(%arg0: i32) -> (i32, i32) {
    %c0_i32 = arith.constant 0 : i32
    %c0_i32_0 = arith.constant 0 : i32
    return %arg0, %c0_i32 : i32, i32
  }
}

module attributes {stable_mosaic.version = 11 : i64} {
  func.func @wire_kernel(%arg0: i32, %arg1: memref<8x32xf32, #tpu.memory_space<vmem>>, %arg2: memref<32x256xf32, #tpu.memory_space<vmem>>, %arg3: memref<1x256xf32, #tpu.memory_space<vmem>>, %arg4: memref<8x128xf32, #tpu.memory_space<vmem>>) attributes {dimension_semantics = [#tpu.dimension_semantics<parallel>], iteration_bounds = array<i64: 1>, scalar_prefetch = 0 : i64, scratch_operands = 0 : i64, tpu.core_type = #tpu.core_type<tc>, window_params = [{transform_indices = @transform_0, window_bounds = array<i64: 8, 32>}, {pipeline_mode = #tpu.pipeline_mode<synchronous>, transform_indices = @transform_1, window_bounds = array<i64: 32, 256>}, {pipeline_mode = #tpu.pipeline_mode<synchronous>, transform_indices = @transform_2, window_bounds = array<i64: 1, 256>}, {transform_indices = @transform_3, window_bounds = array<i64: 8, 128>}]} {
    %c0 = arith.constant 0 : index
    %c0_0 = arith.constant 0 : index
    %0 = vector.load %arg1[%c0, %c0_0] : memref<8x32xf32, #tpu.memory_space<vmem>>, vector<8x32xf32>
    %c0_1 = arith.constant 0 : index
    %c0_2 = arith.constant 0 : index
    %1 = vector.load %arg2[%c0_1, %c0_2] : memref<32x256xf32, #tpu.memory_space<vmem>>, vector<32x256xf32>
    %cst = arith.constant dense<0.000000e+00> : vector<8x256xf32>
    %2 = tpu.matmul %0, %1, %cst {dimension_numbers = #tpu.dot_dimension_numbers<[1], [0], [0], [1], [0, 0, 1, 1], [], []>} : vector<8x32xf32>, vector<32x256xf32>, vector<8x256xf32> -> vector<8x256xf32>
    %c0_3 = arith.constant 0 : index
    %c0_4 = arith.constant 0 : index
    %3 = vector.load %arg3[%c0_3, %c0_4] : memref<1x256xf32, #tpu.memory_space<vmem>>, vector<1x256xf32>
    %4 = vector.broadcast %3 : vector<1x256xf32> to vector<8x256xf32>
    %5 = arith.addf %2, %4 : vector<8x256xf32>
    %6 = vector.extract_strided_slice %5 {offsets = [0, 0], sizes = [8, 128], strides = [1, 1]} : vector<8x256xf32> to vector<8x128xf32>
    %7 = vector.extract_strided_slice %5 {offsets = [0, 128], sizes = [8, 128], strides = [1, 1]} : vector<8x256xf32> to vector<8x128xf32>
    %8 = math.cos %6 : vector<8x128xf32>
    %9 = arith.mulf %7, %7 : vector<8x128xf32>
    %cst_5 = arith.constant 0.000000e+00 : f32
    %10 = vector.broadcast %cst_5 : f32 to vector<8x128xf32>
    %11 = arith.subf %10, %9 : vector<8x128xf32>
    %12 = math.exp %11 : vector<8x128xf32>
    %13 = arith.mulf %8, %12 : vector<8x128xf32>
    %c0_6 = arith.constant 0 : index
    %c0_7 = arith.constant 0 : index
    %14 = vector.load %arg4[%c0_6, %c0_7] : memref<8x128xf32, #tpu.memory_space<vmem>>, vector<8x128xf32>
    tpu.vector_store %arg4[%c0_6, %c0_7], %13 {strides = array<i32>} : memref<8x128xf32, #tpu.memory_space<vmem>>, vector<8x128xf32>,
    return
  }
  func.func @transform_0(%arg0: i32) -> (i32, i32) {
    %c0_i32 = arith.constant 0 : i32
    %c0_i32_0 = arith.constant 0 : i32
    return %arg0, %c0_i32 : i32, i32
  }
  func.func @transform_1(%arg0: i32) -> (i32, i32) {
    %c0_i32 = arith.constant 0 : i32
    %c0_i32_0 = arith.constant 0 : i32
    %c0_i32_1 = arith.constant 0 : i32
    return %c0_i32, %c0_i32_0 : i32, i32
  }
  func.func @transform_2(%arg0: i32) -> (i32, i32) {
    %c0_i32 = arith.constant 0 : i32
    %c0_i32_0 = arith.constant 0 : i32
    %c0_i32_1 = arith.constant 0 : i32
    return %c0_i32, %c0_i32_0 : i32, i32
  }
  func.func @transform_3(%arg0: i32) -> (i32, i32) {
    %c0_i32 = arith.constant 0 : i32
    %c0_i32_0 = arith.constant 0 : i32
    return %arg0, %c0_i32 : i32, i32
  }
}

</mosaic_0001>

<bundles_post_ra>
// kernel: tpu_custom_call.1
= control target key start
LH: loop header
LB: loop body
LE: loop exit
PB: predicated region body
PF: predicated region fallthrough
CT: control target
= control target key end

     0   :  { %8 = vsyncpa [#allocation3], 0  ;;  %s530_s0 = inlined_call_operand.hbm [shape: f32[8,32], index: 0, kind: input, shape index: {}]   ;;  %s531_s1 = inlined_call_operand.hbm [shape: f32[32,256], index: 1, kind: input, shape index: {}]   ;;  %s532_s2 = inlined_call_operand.hbm [shape: f32[1,256], index: 2, kind: input, shape index: {}]   ;;  %s533_s3 = inlined_call_operand.hbm [shape: f32[8,128], index: 3, kind: output, shape index: {}]  }
   0x1   :  { %9 = vsyncpa [#allocation6], 0  ;;  %s26_s14 = sshll.u32 %s531_s1, 4  ;;  %s27_s14 = int_to_ptr.hbm [resolvable:$true] %s26_s14 }
   0x2   :  { %10 = vsyncpa [#allocation4], 0  ;;  %s417_s15 = smov [#allocation5]   ;;  %s16_s19 = sshll.u32 %s530_s0, 4  ;;  %s17_s19 = int_to_ptr.hbm [resolvable:$true] %s16_s19 }
   0x3   :  { %s28_s16 = sshll.u32 %s417_s15, 4  ;;  %s418_s20 = smov 256   ;;  %s29_s16 = int_to_ptr.vmem [resolvable:$true] %s28_s16 }
   0x4   :  { %s419_s21 = smov 16   ;;  %s420_s22 = smov [#allocation2]  }
   0x5   :  { %34 = dma.hbm_to_vmem [thread:$0]  %s27_s14, 1024, %s29_s16, [#allocation6], %s418_s20, %s418_s20, %s419_s21  }
   0x6   :  { %s18_s23 = sshll.u32 %s420_s22, 4  ;;  %s40_s26 = sshll.u32 %s532_s2, 4  ;;  %s19_s23 = int_to_ptr.vmem [resolvable:$true] %s18_s23  ;;  %s41_s26 = int_to_ptr.hbm [resolvable:$true] %s40_s26 }
   0x7   :  { %21 = dma.hbm_to_vmem [thread:$0]  %s17_s19, 128, %s19_s23, [#allocation3]  }
   0x8   :  { %s421_s1 = smov [#allocation7]  }
   0x9   :  { %s42_s27 = sshll.u32 %s421_s1, 4  ;;  %s43_s27 = int_to_ptr.vmem [resolvable:$true] %s42_s27 }
   0xa   :  { %45 = dma.hbm_to_vmem [thread:$0]  %s41_s26, 32, %s43_s27, [#allocation6]  }
   0xb   :  { %411 = dma.done.wait [#allocation3], 128  }
   0xc   :  { %412 = vsyncadd [#allocation3], 4294967168 }
   0xd   :  { %413 = dma.done.wait [#allocation6], 1056  }
   0xe   :  { %414 = vsyncadd [#allocation6], 4294966240  ;;  %v65_v0 = vld [vmem:[#allocation5 + $0x30] sm:$0xff]  ;;  %v63_v1 = vld [vmem:[#allocation5 + $0x20] sm:$0xff]  ;;  %vm73_vm0 = vcmask 261120   ;;  %s429_s0 = smov [#allocation8]  }
   0xf   :  { %89 = vmatpush.msra.mxu0 %v65_v0  ;;  %v66_v2 = vld [vmem:[#allocation5 + $0x38] sm:$0xff]  ;;  %v61_v3 = vld [vmem:[#allocation5 + $0x10] sm:$0xff]  ;;  %v64_v4 = vld [vmem:[#allocation5 + $0x28] sm:$0xff]  ;;  %v422_v24 = vmov 683565275   ;;  %s282_s2 = sshll.u32 %s429_s0, 4  ;;  %s283_s2 = int_to_ptr.vmem [resolvable:$true] %s282_s2 }
  0x10   :  { %109 = vmatpush.msra.mxu1 %v66_v2  ;;  %v62_v5 = vld [vmem:[#allocation5 + $0x18] sm:$0xff]  ;;  %v59_v6 = vld [vmem:[#allocation5] sm:$0xff]  ;;  %v60_v8 = vld [vmem:[#allocation5 + $0x8] sm:$0xff]  ;;  %v423_v26 = vmov 2475754826   ;;  %s284_s30 = sshll.u32 %s533_s3, 4  ;;  %s285_s30 = int_to_ptr.hbm [resolvable:$true] %s284_s30 }
  0x11   :  { %90 = vmatpush.msra.mxu0 %v63_v1  ;;  %v58_v7 = vld [vmem:[#allocation2] sm:$0xff]  ;;  %v459_v9 = vld [vmem:[#allocation7] sm:$0x3]  ;;  %v424_v29 = vmov 2131351028  }
  0x12   :  { %110 = vmatpush.msra.mxu1 %v64_v4  ;;  %v69_v10 = vperm.slane %v459_v9, 0  ;;  %v425_v32 = vmov 2102212464   ;;  %v426_v35 = vmov 920167782  }
  0x13   :  { %91 = vmatpush.msra.mxu0 %v61_v3  ;;  %v427_v38 = vmov 1326507024  }
  0x14   :  { %111 = vmatpush.msra.mxu1 %v62_v5 }
  0x15   :  { %92 = vmatpush.msra.mxu0 %v59_v6 }
  0x16   :  { %295 = vmatmul.msk.f32.vlgmr.msra.gmra.mxu0 %vm73_vm0, %v58_v7  ;;  %112 = vmatpush.msra.mxu1 %v60_v8  ;;  %v428_v8 = vmov 0  }
  0x17   :  { %296 = vmatmul.msk.f32.vlgmr.msra.gmra.mxu1 %vm73_vm0, %v58_v7 }
  0x93   :  { %v94_v11 = vpop.f32.mrf.mxu0 }
  0x94   :  { %v462_v12 = vadd.f32 %v94_v11, %v69_v10 }
  0x96   :  { %v120_v13 = vand.u32 2139095040, %v462_v12  ;;  %v117_v16 = vand.u32 2147483647, %v462_v12  ;;  %vm119_vm13 = vcmp.lt.s32.totalorder %v462_v12, 0 }
  0x98   :  { %v121_v14 = vshrl.u32 %v120_v13, 23  ;;  %v124_v18 = vand.u32 8388607, %v117_v16  ;;  %vm517_vm14 = vcmp.le.f32.partialorder %v117_v16, 0.7853982 }
  0x9a   :  { %v297_v15 = vadd.s32 4294967169, %v121_v14  ;;  %v125_v22 = vor.u32 8388608, %v124_v18 }
  0x9c   :  { %v127_v17 = vadd.s32 1, %v297_v15  ;;  %v479_v45 = vshll.u32 %v125_v22, 8 }
  0x9e   :  { %vm128_vm1 = vcmp.gt.s32.totalorder %v127_v17, 0  ;;  %v166_v54 = vand.u32 65535, %v479_v45  ;;  %v167_v55 = vshrl.u32 %v479_v45, 16 }
  0x9f   :  { %v129_v19 = vsel %vm128_vm1, %v127_v17, 0 }
  0xa0   :  { %v131_v20 = vand.u32 31, %v129_v19  ;;  %v470_v23 = vshrl.u32 %v129_v19, 5 }
  0xa2   :  { %v468_v21 = vsub.s32 32, %v131_v20  ;;  %v134_v25 = vshll.u32 %v422_v24, %v131_v20  ;;  %v137_v27 = vshll.u32 %v423_v26, %v131_v20  ;;  %v140_v31 = vshll.u32 %v424_v29, %v131_v20 }
  0xa3   :  { %v143_v34 = vshll.u32 %v425_v32, %v131_v20  ;;  %v146_v37 = vshll.u32 %v426_v35, %v131_v20  ;;  %vm149_vm2 = vcmp.lt.s32.totalorder %v470_v23, 1  ;;  %vm152_vm3 = vcmp.lt.s32.totalorder %v470_v23, 4 }
  0xa4   :  { %v135_v28 = vshrl.u32 %v423_v26, %v468_v21  ;;  %v138_v30 = vshrl.u32 %v424_v29, %v468_v21  ;;  %v141_v33 = vshrl.u32 %v425_v32, %v468_v21  ;;  %v144_v36 = vshrl.u32 %v426_v35, %v468_v21 }
  0xa5   :  { %v147_v39 = vshrl.u32 %v427_v38, %v468_v21  ;;  %vm151_vm4 = vcmp.lt.s32.totalorder %v470_v23, 3  ;;  %vm150_vm5 = vcmp.lt.s32.totalorder %v470_v23, 2  ;;  %v133_v20 = vshrl.u32 %v422_v24, %v468_v21 }
  0xa6   :  { %v136_v40 = vor.u32 %v135_v28, %v134_v25  ;;  %v139_v41 = vor.u32 %v138_v30, %v137_v27  ;;  %v142_v42 = vor.u32 %v141_v33, %v140_v31  ;;  %v145_v43 = vor.u32 %v144_v36, %v143_v34 }
  0xa7   :  { %v148_v44 = vor.u32 %v147_v39, %v146_v37 }
  0xa8   :  { %v157_v46 = vsel %vm149_vm2, %v136_v40, %v139_v41  ;;  %v161_v47 = vsel %vm149_vm2, %v139_v41, %v142_v42  ;;  %v158_v48 = vsel %vm152_vm3, %v145_v43, 920167782  ;;  %v154_v17 = vsel %vm152_vm3, %v142_v42, 2102212464 }
  0xa9   :  { %v162_v49 = vsel %vm152_vm3, %v148_v44, 1326507024  ;;  %v159_v50 = vsel %vm151_vm4, %v142_v42, %v158_v48  ;;  %v153_v29 = vsel %vm149_vm2, %v133_v20, %v136_v40  ;;  %v155_v30 = vsel %vm151_vm4, %v139_v41, %v154_v17 }
  0xaa   :  { %v163_v51 = vsel %vm151_vm4, %v145_v43, %v162_v49  ;;  %v160_v52 = vsel %vm150_vm5, %v157_v46, %v159_v50  ;;  %v156_v21 = vsel %vm150_vm5, %v153_v29, %v155_v30  ;;  %vm260_vm2 = vweird.f32 %v462_v12 }
  0xab   :  { %v164_v53 = vsel %vm150_vm5, %v161_v47, %v163_v51  ;;  %v190_v58 = vand.u32 65535, %v160_v52  ;;  %v191_v59 = vshrl.u32 %v160_v52, 16  ;;  %v210_v38 = vmul.u32 %v479_v45, %v156_v21 }
  0xac   :  { %v168_v56 = vand.u32 65535, %v164_v53  ;;  %v169_v57 = vshrl.u32 %v164_v53, 16 }
  0xad   :  { %v193_v62 = vmul.u32 %v191_v59, %v166_v54  ;;  %v194_v63 = vmul.u32 %v190_v58, %v167_v55  ;;  %v192_v3 = vmul.u32 %v190_v58, %v166_v54  ;;  %v195_v7 = vmul.u32 %v191_v59, %v167_v55 }
  0xae   :  { %v171_v60 = vmul.u32 %v169_v57, %v166_v54  ;;  %v172_v61 = vmul.u32 %v168_v56, %v167_v55  ;;  %v170_v0 = vmul.u32 %v168_v56, %v166_v54  ;;  %v173_v2 = vmul.u32 %v169_v57, %v167_v55 }
  0xaf   :  { %v196_v4 = vshll.u32 %v193_v62, 16  ;;  %v198_v11 = vshll.u32 %v194_v63, 16  ;;  %v197_v27 = vshrl.u32 %v193_v62, 16  ;;  %v199_v33 = vshrl.u32 %v194_v63, 16 }
  0xb0   :  { %v174_v1 = vshll.u32 %v171_v60, 16  ;;  %v176_v5 = vshll.u32 %v172_v61, 16  ;;  %v175_v22 = vshrl.u32 %v171_v60, 16  ;;  %v177_v31 = vshrl.u32 %v172_v61, 16  ;;  %v114_v61 = vpop.f32.mrf.mxu1 }
  0xb1   :  { %vm200_vm7 = vc.u32 %v192_v3, %v196_v4  ;;  %v202_v13 = vadd.s32 %v196_v4, %v192_v3  ;;  %v70_v60 = vperm.slane %v459_v9, 1 }
  0xb2   :  { %vm178_vm6 = vc.u32 %v170_v0, %v174_v1  ;;  %v180_v6 = vadd.s32 %v174_v1, %v170_v0  ;;  %v201_v15 = vsel %vm200_vm7, 1, %v428_v8 }
  0xb3   :  { %v179_v10 = vsel %vm178_vm6, 1, %v428_v8  ;;  %v203_v19 = vadd.s32 %v201_v15, %v195_v7  ;;  %vm204_vm9 = vc.u32 %v202_v13, %v198_v11  ;;  %v206_v36 = vadd.s32 %v202_v13, %v198_v11 }
  0xb4   :  { %v181_v14 = vadd.s32 %v179_v10, %v173_v2  ;;  %vm182_vm8 = vc.u32 %v180_v6, %v176_v5  ;;  %v205_v26 = vsel %vm204_vm9, 1, %v428_v8  ;;  %v115_v0 = vadd.f32 %v114_v61, %v70_v60 }
  0xb5   :  { %v183_v18 = vsel %vm182_vm8, 1, %v428_v8  ;;  %v207_v28 = vadd.s32 %v205_v26, %v203_v19 }
  0xb6   :  { %v185_v25 = vadd.s32 %v183_v18, %v181_v14  ;;  %v271_v5 = vmul.f32 %v115_v0, %v115_v0 }
  0xb7   :  { %v208_v34 = vadd.s32 %v207_v28, %v197_v27 }
  0xb8   :  { %v186_v32 = vadd.s32 %v185_v25, %v175_v22  ;;  %v272_v10 = vsub.f32 0.0, %v271_v5 }
  0xb9   :  { %v209_v24 = vadd.s32 %v208_v34, %v199_v33 }
  0xba   :  { %v187_v35 = vadd.s32 %v186_v32, %v177_v31  ;;  %v273_v17 = vmul.f32 1.442695, %v272_v10 }
  0xbb   :  { %v213_v37 = vadd.s32 1, %v209_v24 }
  0xbc   :  { %vm212_vm10 = vc.u32 %v187_v35, %v206_v36  ;;  %v211_v23 = vadd.s32 %v206_v36, %v187_v35  ;;  %313 = vpow2.f32 %v273_v17 }
  0xbd   :  { %v214_v39 = vsel %vm212_vm10, %v213_v37, %v209_v24 }
  0xbe   :  { %v215_v42 = vadd.s32 %v214_v39, %v210_v38 }
  0xc0   :  { %v216_v40 = vadd.s32 536870912, %v215_v42 }
  0xc2   :  { %v217_v43 = vshrl.u32 %v216_v40, 30  ;;  %v314_v31 = vpop.eup %313 }
  0xc4   :  { %v218_v44 = vshll.u32 %v217_v43, 30  ;;  %v241_v7 = vsub.s32 4, %v217_v43 }
  0xc6   :  { %v219_v41 = vsub.s32 %v215_v42, %v218_v44  ;;  %v242_v15 = vsel %vm119_vm13, %v241_v7, %v217_v43 }
  0xc7   :  { %v244_v20 = vsel %vm517_vm14, 0, %v242_v15 }
  0xc8   :  { %vm220_vm11 = vcmp.lt.s32.totalorder %v219_v41, 0  ;;  %v221_v46 = vsub.s32 0, %v219_v41  ;;  %v261_v27 = vand.u32 3, %v244_v20 }
  0xca   :  { %v222_v47 = vsel %vm220_vm11, %v221_v46, %v219_v41  ;;  %vm263_vm15 = vcmp.eq.s32.totalorder %v261_v27, 0  ;;  %vm266_vm0 = vcmp.eq.s32.totalorder %v261_v27, 2  ;;  %vm262_vm1 = vcmp.lt.s32.totalorder %v261_v27, 2 }
  0xcb   :  { %v223_v48 = vclz %v222_v47 }
  0xcd   :  { %v298_v49 = vadd.s32 4294967294, %v223_v48 }
  0xcf   :  { %vm299_vm12 = vcmp.lt.s32.totalorder %v298_v49, 0 }
  0xd0   :  { %v226_v50 = vsel %vm299_vm12, 0, %v298_v49 }
  0xd1   :  { %v227_v51 = vsub.s32 32, %v226_v50  ;;  %v231_v52 = vsub.s32 4294967266, %v226_v50  ;;  %v228_v53 = vshll.u32 %v219_v41, %v226_v50 }
  0xd3   :  { %v229_v54 = vshrl.u32 %v211_v23, %v227_v51  ;;  %v232_v55 = vadd.s32 127, %v231_v52 }
  0xd5   :  { %v230_v45 = vor.u32 %v229_v54, %v228_v53  ;;  %v233_v56 = vshll.u32 %v232_v55, 23 }
  0xd7   :  { %v234_v57 = vor.u32 4788187, %v233_v56  ;;  %v237_v59 = vcvt.s32.f32 %v230_v45 }
  0xd9   :  { %v235_v58 = vand.u32 2147483647, %v234_v57 }
  0xdb   :  { %v238_v62 = vmul.f32 %v237_v59, %v235_v58 }
  0xdd   :  { %v239_v63 = vxor.u32 2147483648, %v238_v62 }
  0xdf   :  { %v240_v2 = vsel %vm119_vm13, %v239_v63, %v238_v62 }
  0xe0   :  { %v243_v3 = vsel %vm517_vm14, %v462_v12, %v240_v2 }
  0xe1   :  { %v245_v4 = vmul.f32 %v243_v3, %v243_v3 }
  0xe3   :  { %v253_v9 = vmul.f32 -0.00019511016, %v245_v4  ;;  %v246_v6 = vmul.f32 -0.001358992, %v245_v4 }
  0xe5   :  { %v254_v8 = vadd.f32 0.008332121, %v253_v9  ;;  %v247_v11 = vadd.f32 0.041655596, %v246_v6 }
  0xe7   :  { %v255_v13 = vmul.f32 %v254_v8, %v245_v4  ;;  %v248_v14 = vmul.f32 %v247_v11, %v245_v4 }
  0xe9   :  { %v256_v16 = vadd.f32 -0.16666654, %v255_v13  ;;  %v249_v18 = vadd.f32 -0.4999988, %v248_v14 }
  0xeb   :  { %v257_v19 = vmul.f32 %v256_v16, %v245_v4  ;;  %v250_v22 = vmul.f32 %v249_v18, %v245_v4 }
  0xed   :  { %v258_v25 = vadd.f32 1.0, %v257_v19  ;;  %v251_v26 = vadd.f32 1.0, %v250_v22 }
  0xef   :  { %v259_v28 = vmul.f32 %v258_v25, %v243_v3  ;;  %v267_v29 = vxor.u32 2147483648, %v251_v26 }
  0xf1   :  { %v264_v30 = vxor.u32 2147483648, %v259_v28  ;;  %v268_v33 = vsel %vm266_vm0, %v267_v29, %v259_v28 }
  0xf3   :  { %v265_v32 = vsel %vm263_vm15, %v251_v26, %v264_v30 }
  0xf4   :  { %v269_v34 = vsel %vm262_vm1, %v265_v32, %v268_v33 }
  0xf5   :  { %v270_v35 = vsel %vm260_vm2, nan, %v269_v34 }
  0xf6   :  { %v275_v36 = vmul.f32 %v314_v31, %v270_v35 }
  0xf8   :  { %276 = vst [vmem:[#allocation8] sm:$0xff] %v275_v36 }
  0xf9   :  { %287 = dma.vmem_to_hbm [thread:$0]  %s283_s2, 128, %s285_s30, [#allocation4]  }
  0xfa   :  { %415 = dma.done.wait [#allocation4], 128  }
  0xfb   :  { %416 = vsyncadd [#allocation4], 4294967168 }
  0xfc   :  { %292 = vsyncpa [#allocation3], 1 }
  0xfd   :  { %293 = vsyncpa [#allocation6], 1 }
  0xfe   :  { %294 = vsyncpa [#allocation4], 1 }

// kernel: tpu_custom_call.1
= control target key start
LH: loop header
LB: loop body
LE: loop exit
PB: predicated region body
PF: predicated region fallthrough
CT: control target
= control target key end

     0   :  { %8 = vsyncpa [#allocation3], 0  ;;  %s530_s0 = inlined_call_operand.hbm [shape: f32[8,32], index: 0, kind: input, shape index: {}]   ;;  %s531_s1 = inlined_call_operand.hbm [shape: f32[32,256], index: 1, kind: input, shape index: {}]   ;;  %s532_s2 = inlined_call_operand.hbm [shape: f32[1,256], index: 2, kind: input, shape index: {}]   ;;  %s533_s3 = inlined_call_operand.hbm [shape: f32[8,128], index: 3, kind: output, shape index: {}]  }
   0x1   :  { %9 = vsyncpa [#allocation6], 0  ;;  %s26_s14 = sshll.u32 %s531_s1, 4  ;;  %s27_s14 = int_to_ptr.hbm [resolvable:$true] %s26_s14 }
   0x2   :  { %10 = vsyncpa [#allocation4], 0  ;;  %s417_s15 = smov [#allocation5]   ;;  %s16_s19 = sshll.u32 %s530_s0, 4  ;;  %s17_s19 = int_to_ptr.hbm [resolvable:$true] %s16_s19 }
   0x3   :  { %s28_s16 = sshll.u32 %s417_s15, 4  ;;  %s418_s20 = smov 256   ;;  %s29_s16 = int_to_ptr.vmem [resolvable:$true] %s28_s16 }
   0x4   :  { %s419_s21 = smov 16   ;;  %s420_s22 = smov [#allocation2]  }
   0x5   :  { %34 = dma.hbm_to_vmem [thread:$0]  %s27_s14, 1024, %s29_s16, [#allocation6], %s418_s20, %s418_s20, %s419_s21  }
   0x6   :  { %s18_s23 = sshll.u32 %s420_s22, 4  ;;  %s40_s26 = sshll.u32 %s532_s2, 4  ;;  %s19_s23 = int_to_ptr.vmem [resolvable:$true] %s18_s23  ;;  %s41_s26 = int_to_ptr.hbm [resolvable:$true] %s40_s26 }
   0x7   :  { %21 = dma.hbm_to_vmem [thread:$0]  %s17_s19, 128, %s19_s23, [#allocation3]  }
   0x8   :  { %s421_s1 = smov [#allocation7]  }
   0x9   :  { %s42_s27 = sshll.u32 %s421_s1, 4  ;;  %s43_s27 = int_to_ptr.vmem [resolvable:$true] %s42_s27 }
   0xa   :  { %45 = dma.hbm_to_vmem [thread:$0]  %s41_s26, 32, %s43_s27, [#allocation6]  }
   0xb   :  { %411 = dma.done.wait [#allocation3], 128  }
   0xc   :  { %412 = vsyncadd [#allocation3], 4294967168 }
   0xd   :  { %413 = dma.done.wait [#allocation6], 1056  }
   0xe   :  { %414 = vsyncadd [#allocation6], 4294966240  ;;  %v65_v0 = vld [vmem:[#allocation5 + $0x30] sm:$0xff]  ;;  %v63_v1 = vld [vmem:[#allocation5 + $0x20] sm:$0xff]  ;;  %vm73_vm0 = vcmask 261120   ;;  %s429_s0 = smov [#allocation8]  }
   0xf   :  { %89 = vmatpush.msra.mxu0 %v65_v0  ;;  %v66_v2 = vld [vmem:[#allocation5 + $0x38] sm:$0xff]  ;;  %v61_v3 = vld [vmem:[#allocation5 + $0x10] sm:$0xff]  ;;  %v64_v4 = vld [vmem:[#allocation5 + $0x28] sm:$0xff]  ;;  %v422_v24 = vmov 683565275   ;;  %s282_s2 = sshll.u32 %s429_s0, 4  ;;  %s283_s2 = int_to_ptr.vmem [resolvable:$true] %s282_s2 }
  0x10   :  { %109 = vmatpush.msra.mxu1 %v66_v2  ;;  %v62_v5 = vld [vmem:[#allocation5 + $0x18] sm:$0xff]  ;;  %v59_v6 = vld [vmem:[#allocation5] sm:$0xff]  ;;  %v60_v8 = vld [vmem:[#allocation5 + $0x8] sm:$0xff]  ;;  %v423_v26 = vmov 2475754826   ;;  %s284_s30 = sshll.u32 %s533_s3, 4  ;;  %s285_s30 = int_to_ptr.hbm [resolvable:$true] %s284_s30 }
  0x11   :  { %90 = vmatpush.msra.mxu0 %v63_v1  ;;  %v58_v7 = vld [vmem:[#allocation2] sm:$0xff]  ;;  %v459_v9 = vld [vmem:[#allocation7] sm:$0x3]  ;;  %v424_v29 = vmov 2131351028  }
  0x12   :  { %110 = vmatpush.msra.mxu1 %v64_v4  ;;  %v69_v10 = vperm.slane %v459_v9, 0  ;;  %v425_v32 = vmov 2102212464   ;;  %v426_v35 = vmov 920167782  }
  0x13   :  { %91 = vmatpush.msra.mxu0 %v61_v3  ;;  %v427_v38 = vmov 1326507024  }
  0x14   :  { %111 = vmatpush.msra.mxu1 %v62_v5 }
  0x15   :  { %92 = vmatpush.msra.mxu0 %v59_v6 }
  0x16   :  { %295 = vmatmul.msk.f32.vlgmr.msra.gmra.mxu0 %vm73_vm0, %v58_v7  ;;  %112 = vmatpush.msra.mxu1 %v60_v8  ;;  %v428_v8 = vmov 0  }
  0x17   :  { %296 = vmatmul.msk.f32.vlgmr.msra.gmra.mxu1 %vm73_vm0, %v58_v7 }
  0x93   :  { %v94_v11 = vpop.f32.mrf.mxu0 }
  0x94   :  { %v462_v12 = vadd.f32 %v94_v11, %v69_v10 }
  0x96   :  { %v120_v13 = vand.u32 2139095040, %v462_v12  ;;  %v117_v16 = vand.u32 2147483647, %v462_v12  ;;  %vm119_vm13 = vcmp.lt.s32.totalorder %v462_v12, 0 }
  0x98   :  { %v121_v14 = vshrl.u32 %v120_v13, 23  ;;  %v124_v18 = vand.u32 8388607, %v117_v16  ;;  %vm517_vm14 = vcmp.le.f32.partialorder %v117_v16, 0.7853982 }
  0x9a   :  { %v297_v15 = vadd.s32 4294967169, %v121_v14  ;;  %v125_v22 = vor.u32 8388608, %v124_v18 }
  0x9c   :  { %v127_v17 = vadd.s32 1, %v297_v15  ;;  %v479_v45 = vshll.u32 %v125_v22, 8 }
  0x9e   :  { %vm128_vm1 = vcmp.gt.s32.totalorder %v127_v17, 0  ;;  %v166_v54 = vand.u32 65535, %v479_v45  ;;  %v167_v55 = vshrl.u32 %v479_v45, 16 }
  0x9f   :  { %v129_v19 = vsel %vm128_vm1, %v127_v17, 0 }
  0xa0   :  { %v131_v20 = vand.u32 31, %v129_v19  ;;  %v470_v23 = vshrl.u32 %v129_v19, 5 }
  0xa2   :  { %v468_v21 = vsub.s32 32, %v131_v20  ;;  %v134_v25 = vshll.u32 %v422_v24, %v131_v20  ;;  %v137_v27 = vshll.u32 %v423_v26, %v131_v20  ;;  %v140_v31 = vshll.u32 %v424_v29, %v131_v20 }
  0xa3   :  { %v143_v34 = vshll.u32 %v425_v32, %v131_v20  ;;  %v146_v37 = vshll.u32 %v426_v35, %v131_v20  ;;  %vm149_vm2 = vcmp.lt.s32.totalorder %v470_v23, 1  ;;  %vm152_vm3 = vcmp.lt.s32.totalorder %v470_v23, 4 }
  0xa4   :  { %v135_v28 = vshrl.u32 %v423_v26, %v468_v21  ;;  %v138_v30 = vshrl.u32 %v424_v29, %v468_v21  ;;  %v141_v33 = vshrl.u32 %v425_v32, %v468_v21  ;;  %v144_v36 = vshrl.u32 %v426_v35, %v468_v21 }
  0xa5   :  { %v147_v39 = vshrl.u32 %v427_v38, %v468_v21  ;;  %vm151_vm4 = vcmp.lt.s32.totalorder %v470_v23, 3  ;;  %vm150_vm5 = vcmp.lt.s32.totalorder %v470_v23, 2  ;;  %v133_v20 = vshrl.u32 %v422_v24, %v468_v21 }
  0xa6   :  { %v136_v40 = vor.u32 %v135_v28, %v134_v25  ;;  %v139_v41 = vor.u32 %v138_v30, %v137_v27  ;;  %v142_v42 = vor.u32 %v141_v33, %v140_v31  ;;  %v145_v43 = vor.u32 %v144_v36, %v143_v34 }
  0xa7   :  { %v148_v44 = vor.u32 %v147_v39, %v146_v37 }
  0xa8   :  { %v157_v46 = vsel %vm149_vm2, %v136_v40, %v139_v41  ;;  %v161_v47 = vsel %vm149_vm2, %v139_v41, %v142_v42  ;;  %v158_v48 = vsel %vm152_vm3, %v145_v43, 920167782  ;;  %v154_v17 = vsel %vm152_vm3, %v142_v42, 2102212464 }
  0xa9   :  { %v162_v49 = vsel %vm152_vm3, %v148_v44, 1326507024  ;;  %v159_v50 = vsel %vm151_vm4, %v142_v42, %v158_v48  ;;  %v153_v29 = vsel %vm149_vm2, %v133_v20, %v136_v40  ;;  %v155_v30 = vsel %vm151_vm4, %v139_v41, %v154_v17 }
  0xaa   :  { %v163_v51 = vsel %vm151_vm4, %v145_v43, %v162_v49  ;;  %v160_v52 = vsel %vm150_vm5, %v157_v46, %v159_v50  ;;  %v156_v21 = vsel %vm150_vm5, %v153_v29, %v155_v30  ;;  %vm260_vm2 = vweird.f32 %v462_v12 }
  0xab   :  { %v164_v53 = vsel %vm150_vm5, %v161_v47, %v163_v51  ;;  %v190_v58 = vand.u32 65535, %v160_v52  ;;  %v191_v59 = vshrl.u32 %v160_v52, 16  ;;  %v210_v38 = vmul.u32 %v479_v45, %v156_v21 }
  0xac   :  { %v168_v56 = vand.u32 65535, %v164_v53  ;;  %v169_v57 = vshrl.u32 %v164_v53, 16 }
  0xad   :  { %v193_v62 = vmul.u32 %v191_v59, %v166_v54  ;;  %v194_v63 = vmul.u32 %v190_v58, %v167_v55  ;;  %v192_v3 = vmul.u32 %v190_v58, %v166_v54  ;;  %v195_v7 = vmul.u32 %v191_v59, %v167_v55 }
  0xae   :  { %v171_v60 = vmul.u32 %v169_v57, %v166_v54  ;;  %v172_v61 = vmul.u32 %v168_v56, %v167_v55  ;;  %v170_v0 = vmul.u32 %v168_v56, %v166_v54  ;;  %v173_v2 = vmul.u32 %v169_v57, %v167_v55 }
  0xaf   :  { %v196_v4 = vshll.u32 %v193_v62, 16  ;;  %v198_v11 = vshll.u32 %v194_v63, 16  ;;  %v197_v27 = vshrl.u32 %v193_v62, 16  ;;  %v199_v33 = vshrl.u32 %v194_v63, 16 }
  0xb0   :  { %v174_v1 = vshll.u32 %v171_v60, 16  ;;  %v176_v5 = vshll.u32 %v172_v61, 16  ;;  %v175_v22 = vshrl.u32 %v171_v60, 16  ;;  %v177_v31 = vshrl.u32 %v172_v61, 16  ;;  %v114_v61 = vpop.f32.mrf.mxu1 }
  0xb1   :  { %vm200_vm7 = vc.u32 %v192_v3, %v196_v4  ;;  %v202_v13 = vadd.s32 %v196_v4, %v192_v3  ;;  %v70_v60 = vperm.slane %v459_v9, 1 }
  0xb2   :  { %vm178_vm6 = vc.u32 %v170_v0, %v174_v1  ;;  %v180_v6 = vadd.s32 %v174_v1, %v170_v0  ;;  %v201_v15 = vsel %vm200_vm7, 1, %v428_v8 }
  0xb3   :  { %v179_v10 = vsel %vm178_vm6, 1, %v428_v8  ;;  %v203_v19 = vadd.s32 %v201_v15, %v195_v7  ;;  %vm204_vm9 = vc.u32 %v202_v13, %v198_v11  ;;  %v206_v36 = vadd.s32 %v202_v13, %v198_v11 }
  0xb4   :  { %v181_v14 = vadd.s32 %v179_v10, %v173_v2  ;;  %vm182_vm8 = vc.u32 %v180_v6, %v176_v5  ;;  %v205_v26 = vsel %vm204_vm9, 1, %v428_v8  ;;  %v115_v0 = vadd.f32 %v114_v61, %v70_v60 }
  0xb5   :  { %v183_v18 = vsel %vm182_vm8, 1, %v428_v8  ;;  %v207_v28 = vadd.s32 %v205_v26, %v203_v19 }
  0xb6   :  { %v185_v25 = vadd.s32 %v183_v18, %v181_v14  ;;  %v271_v5 = vmul.f32 %v115_v0, %v115_v0 }
  0xb7   :  { %v208_v34 = vadd.s32 %v207_v28, %v197_v27 }
  0xb8   :  { %v186_v32 = vadd.s32 %v185_v25, %v175_v22  ;;  %v272_v10 = vsub.f32 0.0, %v271_v5 }
  0xb9   :  { %v209_v24 = vadd.s32 %v208_v34, %v199_v33 }
  0xba   :  { %v187_v35 = vadd.s32 %v186_v32, %v177_v31  ;;  %v273_v17 = vmul.f32 1.442695, %v272_v10 }
  0xbb   :  { %v213_v37 = vadd.s32 1, %v209_v24 }
  0xbc   :  { %vm212_vm10 = vc.u32 %v187_v35, %v206_v36  ;;  %v211_v23 = vadd.s32 %v206_v36, %v187_v35  ;;  %313 = vpow2.f32 %v273_v17 }
  0xbd   :  { %v214_v39 = vsel %vm212_vm10, %v213_v37, %v209_v24 }
  0xbe   :  { %v215_v42 = vadd.s32 %v214_v39, %v210_v38 }
  0xc0   :  { %v216_v40 = vadd.s32 536870912, %v215_v42 }
  0xc2   :  { %v217_v43 = vshrl.u32 %v216_v40, 30  ;;  %v314_v31 = vpop.eup %313 }
  0xc4   :  { %v218_v44 = vshll.u32 %v217_v43, 30  ;;  %v241_v7 = vsub.s32 4, %v217_v43 }
  0xc6   :  { %v219_v41 = vsub.s32 %v215_v42, %v218_v44  ;;  %v242_v15 = vsel %vm119_vm13, %v241_v7, %v217_v43 }
  0xc7   :  { %v244_v20 = vsel %vm517_vm14, 0, %v242_v15 }
  0xc8   :  { %vm220_vm11 = vcmp.lt.s32.totalorder %v219_v41, 0  ;;  %v221_v46 = vsub.s32 0, %v219_v41  ;;  %v261_v27 = vand.u32 3, %v244_v20 }
  0xca   :  { %v222_v47 = vsel %vm220_vm11, %v221_v46, %v219_v41  ;;  %vm263_vm15 = vcmp.eq.s32.totalorder %v261_v27, 0  ;;  %vm266_vm0 = vcmp.eq.s32.totalorder %v261_v27, 2  ;;  %vm262_vm1 = vcmp.lt.s32.totalorder %v261_v27, 2 }
  0xcb   :  { %v223_v48 = vclz %v222_v47 }
  0xcd   :  { %v298_v49 = vadd.s32 4294967294, %v223_v48 }
  0xcf   :  { %vm299_vm12 = vcmp.lt.s32.totalorder %v298_v49, 0 }
  0xd0   :  { %v226_v50 = vsel %vm299_vm12, 0, %v298_v49 }
  0xd1   :  { %v227_v51 = vsub.s32 32, %v226_v50  ;;  %v231_v52 = vsub.s32 4294967266, %v226_v50  ;;  %v228_v53 = vshll.u32 %v219_v41, %v226_v50 }
  0xd3   :  { %v229_v54 = vshrl.u32 %v211_v23, %v227_v51  ;;  %v232_v55 = vadd.s32 127, %v231_v52 }
  0xd5   :  { %v230_v45 = vor.u32 %v229_v54, %v228_v53  ;;  %v233_v56 = vshll.u32 %v232_v55, 23 }
  0xd7   :  { %v234_v57 = vor.u32 4788187, %v233_v56  ;;  %v237_v59 = vcvt.s32.f32 %v230_v45 }
  0xd9   :  { %v235_v58 = vand.u32 2147483647, %v234_v57 }
  0xdb   :  { %v238_v62 = vmul.f32 %v237_v59, %v235_v58 }
  0xdd   :  { %v239_v63 = vxor.u32 2147483648, %v238_v62 }
  0xdf   :  { %v240_v2 = vsel %vm119_vm13, %v239_v63, %v238_v62 }
  0xe0   :  { %v243_v3 = vsel %vm517_vm14, %v462_v12, %v240_v2 }
  0xe1   :  { %v245_v4 = vmul.f32 %v243_v3, %v243_v3 }
  0xe3   :  { %v253_v9 = vmul.f32 -0.00019511016, %v245_v4  ;;  %v246_v6 = vmul.f32 -0.001358992, %v245_v4 }
  0xe5   :  { %v254_v8 = vadd.f32 0.008332121, %v253_v9  ;;  %v247_v11 = vadd.f32 0.041655596, %v246_v6 }
  0xe7   :  { %v255_v13 = vmul.f32 %v254_v8, %v245_v4  ;;  %v248_v14 = vmul.f32 %v247_v11, %v245_v4 }
  0xe9   :  { %v256_v16 = vadd.f32 -0.16666654, %v255_v13  ;;  %v249_v18 = vadd.f32 -0.4999988, %v248_v14 }
  0xeb   :  { %v257_v19 = vmul.f32 %v256_v16, %v245_v4  ;;  %v250_v22 = vmul.f32 %v249_v18, %v245_v4 }
  0xed   :  { %v258_v25 = vadd.f32 1.0, %v257_v19  ;;  %v251_v26 = vadd.f32 1.0, %v250_v22 }
  0xef   :  { %v259_v28 = vmul.f32 %v258_v25, %v243_v3  ;;  %v267_v29 = vxor.u32 2147483648, %v251_v26 }
  0xf1   :  { %v264_v30 = vxor.u32 2147483648, %v259_v28  ;;  %v268_v33 = vsel %vm266_vm0, %v267_v29, %v259_v28 }
  0xf3   :  { %v265_v32 = vsel %vm263_vm15, %v251_v26, %v264_v30 }
  0xf4   :  { %v269_v34 = vsel %vm262_vm1, %v265_v32, %v268_v33 }
  0xf5   :  { %v270_v35 = vsel %vm260_vm2, nan, %v269_v34 }
  0xf6   :  { %v275_v36 = vmul.f32 %v314_v31, %v270_v35 }
  0xf8   :  { %276 = vst [vmem:[#allocation8] sm:$0xff] %v275_v36 }
  0xf9   :  { %287 = dma.vmem_to_hbm [thread:$0]  %s283_s2, 128, %s285_s30, [#allocation4]  }
  0xfa   :  { %415 = dma.done.wait [#allocation4], 128  }
  0xfb   :  { %416 = vsyncadd [#allocation4], 4294967168 }
  0xfc   :  { %292 = vsyncpa [#allocation3], 1 }
  0xfd   :  { %293 = vsyncpa [#allocation6], 1 }
  0xfe   :  { %294 = vsyncpa [#allocation4], 1 }

</bundles_post_ra>
